<compile_context>
chip_gen: v7x
topology: tpu7x:2x2x1
jax: 0.10.0
libtpu: 0.0.40
codegen_flags: <defaults>
</compile_context>

<pallas_src>
import functools

import jax
import jax.numpy as jnp
from jax.experimental import pallas as pl
from jax.experimental.pallas import tpu as pltpu


# ----------------------------------------------------------------------------
# helpers
# ----------------------------------------------------------------------------
def _vmem_budget():
    """(vmem_limit_bytes, logits_block_target_bytes), generation-aware."""
    cap = None
    try:
        info = pltpu.get_tpu_info()
        cap = getattr(info, "vmem_capacity_bytes", None)
    except Exception:
        cap = None
    if cap is None:
        cap = 64 * 1024 * 1024
    if cap <= 64 * 1024 * 1024:                      # v7x-class: 64 MiB / TC
        return 48 * 1024 * 1024, 4 * 1024 * 1024
    return 64 * 1024 * 1024, 8 * 1024 * 1024         # v5e / v6e: 128 MiB


def _pick_tile(S, bytes_per_lane, target_bytes, cap):
    """Largest lane tile (multiple of 128, <= cap) with ~target_bytes per block.
    Returns S itself (full extent) when the tile would cover the whole axis."""
    t = (target_bytes // max(bytes_per_lane, 1)) // 128 * 128
    t = max(128, min(t, max(cap, 128)))
    if t >= S:
        return max(S, 1)                             # single full-extent block
    return t


def _class_weights(counts, numel):
    """Per-class weights from inverse local frequency (matches calculate_weights)."""
    countsf = counts.astype(jnp.float32)
    inv = jnp.where(countsf > 0, jnp.float32(numel) / countsf, 0.0)
    denom = jnp.sum(inv)
    w = inv / jnp.where(denom > 0, denom, jnp.float32(1.0))
    return jnp.where(countsf > 0, w, jnp.float32(1e-5))


# ----------------------------------------------------------------------------
# Kernel A (mean / sum): fused histogram + cross-entropy.
#   Accumulates per-class nll sums and per-class valid counts in one pass.
# ----------------------------------------------------------------------------
def _fused_kernel(x_ref, t_ref, nllsum_ref, cnt_ref, nll_acc, cnt_acc, *,
                  S, t_s, tiles_per_g, ignore_index, need_ignore):
    g = pl.program_id(1)
    s = pl.program_id(2)

    @pl.when(s == 0)
    def _():
        nll_acc[...] = jnp.zeros_like(nll_acc)
        cnt_acc[...] = jnp.zeros_like(cnt_acc)

    x = x_ref[0].astype(jnp.float32)                                   # (C, t)
    t = t_ref[0]                                                       # (1, t)
    num_class = x.shape[0]

    # in-bounds lane mask (no glue-side padding anywhere)
    lane = jax.lax.broadcasted_iota(jnp.int32, (1, t_s), 1)
    mask = ((g * tiles_per_g + s) * t_s + lane) < S                    # (1, t)
    if need_ignore:
        mask = jnp.logical_and(mask, t != ignore_index)

    classes = jax.lax.broadcasted_iota(jnp.int32, (num_class, 1), 0)   # (C, 1)
    onehot = (t == classes).astype(jnp.float32)                        # (C, t)
    onehot_m = onehot * mask.astype(jnp.float32)                       # (C, t)

    # numerically stable log-sum-exp over the class (sublane) axis
    m = jnp.max(x, axis=0, keepdims=True)                              # (1, t)
    lse = m + jnp.log(jnp.sum(jnp.exp(x - m), axis=0, keepdims=True))  # (1, t)
    x_t = jnp.sum(onehot * x, axis=0, keepdims=True)                   # (1, t)
    nll = jnp.where(mask, lse - x_t, 0.0)            # kills NaN/Inf of OOB lanes

    nll_acc[...] += onehot_m * nll                                     # (C, t)
    cnt_acc[...] += onehot_m                                           # (C, t)

    @pl.when(s == pl.num_programs(2) - 1)
    def _():
        nllsum_ref[...] = jnp.sum(nll_acc[...], axis=-1, keepdims=True)[None]
        cnt_ref[...] = jnp.sum(cnt_acc[...], axis=-1, keepdims=True)[None]


# ----------------------------------------------------------------------------
# Kernel B ('none' path): per-class counts (histogram over the target batch).
# ----------------------------------------------------------------------------
def _counts_kernel(t_ref, cnt_ref, *, S, t_h, tiles_per_g, num_class,
                   ignore_index, need_ignore):
    g = pl.program_id(1)
    s = pl.program_id(2)

    @pl.when(s == 0)
    def _():
        cnt_ref[...] = jnp.zeros_like(cnt_ref)

    t = t_ref[0]                                                       # (1, th)
    lane = jax.lax.broadcasted_iota(jnp.int32, (1, t_h), 1)
    mask = ((g * tiles_per_g + s) * t_h + lane) < S
    classes = jax.lax.broadcasted_iota(jnp.int32, (num_class, 1), 0)   # (C, 1)
    hit = jnp.logical_and(t == classes, mask)                          # (C, th)
    if need_ignore:
        hit = jnp.logical_and(hit, t != ignore_index)
    # per-tile partial is exact in f32 (tile <= 2^19 < 2^24); accumulate in int32
    part = jnp.sum(hit.astype(jnp.float32), axis=-1, keepdims=True)    # (C, 1)
    cnt_ref[...] += part.astype(jnp.int32)[None]                       # (1, C, 1)


# ----------------------------------------------------------------------------
# Kernel C ('none' path): plain per-element nll (weights applied in glue).
#   No masking needed: OOB tail writes are dropped; ignored/weighting in glue.
# ----------------------------------------------------------------------------
def _nll_kernel(x_ref, t_ref, out_ref):
    x = x_ref[0].astype(jnp.float32)                                   # (C, t)
    t = t_ref[0]                                                       # (1, t)
    num_class = x.shape[0]
    classes = jax.lax.broadcasted_iota(jnp.int32, (num_class, 1), 0)
    onehot = (t == classes).astype(jnp.float32)
    m = jnp.max(x, axis=0, keepdims=True)
    lse = m + jnp.log(jnp.sum(jnp.exp(x - m), axis=0, keepdims=True))
    x_t = jnp.sum(onehot * x, axis=0, keepdims=True)
    out_ref[...] = (lse - x_t)[None]                                   # (1, 1, t)


# ----------------------------------------------------------------------------
# Wrapper
# ----------------------------------------------------------------------------
def locally_weighted_entropy_loss(predict, target, ignore_index=-100,
                                  reduction="mean", *, _tile_s=None, _tile_h=None):
    """predict: (N, C, ...) float; target: (N, ...) int.  Same semantics as the
    PyTorch module (per-class weights from inverse local class frequency)."""
    if reduction not in ("mean", "sum", "none"):
        raise ValueError(f"unknown reduction: {reduction}")

    num_class = predict.shape[1]
    N = predict.shape[0]

    # native NCS layout (free reshape for the common N,C,H,W case; no transpose)
    if predict.ndim == 2:
        logits3 = jnp.transpose(predict, (1, 0))[None]          # (1, C, N) (tiny)
        tgt2 = target.reshape(1, -1).astype(jnp.int32)
    else:
        logits3 = predict.reshape(N, num_class, -1)             # (N, C, S)
        tgt2 = target.reshape(N, -1).astype(jnp.int32)

    B, C, S = logits3.shape
    tgt3 = tgt2.reshape(B, 1, S)
    numel = float(tgt2.size)            # denominator of the frequency ratio
    need_ignore = (0 <= ignore_index < C)

    # --- generation-aware tile / VMEM budget ---
    vmem_limit, logits_block_bytes = _vmem_budget()
    itemsize = jnp.dtype(logits3.dtype).itemsize
    # resident bytes per lane (fused path is the most demanding): 2x double-
    # buffered logits blocks + two f32 (C, t) scratch accumulators + targets/out
    per_lane = C * (2 * itemsize + 8) + 16
    vmem_cap_lanes = max(128, ((2 * vmem_limit // 3) // per_lane) // 128 * 128)
    if _tile_s is not None:
        t_s = _tile_s
    else:
        t_s = _pick_tile(S, C * itemsize, logits_block_bytes,
                         min(vmem_cap_lanes, 1 << 17))
    n_tiles = pl.cdiv(S, t_s)
    # second parallel axis over the spatial tiles (keeps both v7x TCs busy even
    # for B == 1); only when it divides evenly so no block is fully OOB.
    G = 2 if (n_tiles >= 2 and n_tiles % 2 == 0) else 1
    T_g = n_tiles // G

    cparams3 = pltpu.CompilerParams(
        dimension_semantics=("parallel", "parallel", "arbitrary"),
        vmem_limit_bytes=vmem_limit)

    # ------------------------------------------------------------------
    # mean / sum: single fused pass
    # ------------------------------------------------------------------
    if reduction in ("mean", "sum"):
        nllsum_p, cnt_p = pl.pallas_call(
            functools.partial(_fused_kernel, S=S, t_s=t_s, tiles_per_g=T_g,
                              ignore_index=ignore_index, need_ignore=need_ignore),
            out_shape=(jax.ShapeDtypeStruct((B * G, C, 1), jnp.float32),
                       jax.ShapeDtypeStruct((B * G, C, 1), jnp.float32)),
            grid=(B, G, T_g),
            in_specs=[
                pl.BlockSpec((1, C, t_s), lambda n, g, s, T=T_g: (n, 0, g * T + s)),
                pl.BlockSpec((1, 1, t_s), lambda n, g, s, T=T_g: (n, 0, g * T + s)),
            ],
            out_specs=(
                pl.BlockSpec((1, C, 1), lambda n, g, s, G_=G: (n * G_ + g, 0, 0)),
                pl.BlockSpec((1, C, 1), lambda n, g, s, G_=G: (n * G_ + g, 0, 0)),
            ),
            scratch_shapes=[pltpu.VMEM((C, t_s), jnp.float32),
                            pltpu.VMEM((C, t_s), jnp.float32)],
            compiler_params=cparams3,
        )(logits3, tgt3)

        nllsum_c = jnp.sum(nllsum_p[:, :, 0], axis=0)        # (C,)
        counts_c = jnp.sum(cnt_p[:, :, 0], axis=0)           # (C,)
        loss_weight = _class_weights(counts_c, numel)         # (C,)
        loss_sum = jnp.sum(loss_weight * nllsum_c)
        if reduction == "sum":
            return loss_sum
        wsum = jnp.sum(loss_weight * counts_c)
        return loss_sum / wsum

    # ------------------------------------------------------------------
    # 'none': counts kernel -> weights -> per-element nll kernel
    # ------------------------------------------------------------------
    t_h = _tile_h if _tile_h is not None else _pick_tile(S, 4, 2 << 20, 1 << 19)
    n_tiles_h = pl.cdiv(S, t_h)
    Gh = 2 if (n_tiles_h >= 2 and n_tiles_h % 2 == 0) else 1
    T_gh = n_tiles_h // Gh

    counts_p = pl.pallas_call(
        functools.partial(_counts_kernel, S=S, t_h=t_h, tiles_per_g=T_gh,
                          num_class=C, ignore_index=ignore_index,
                          need_ignore=need_ignore),
        out_shape=jax.ShapeDtypeStruct((B * Gh, C, 1), jnp.int32),
        grid=(B, Gh, T_gh),
        in_specs=[pl.BlockSpec((1, 1, t_h), lambda n, g, s, T=T_gh: (n, 0, g * T + s))],
        out_specs=pl.BlockSpec((1, C, 1), lambda n, g, s, G_=Gh: (n * G_ + g, 0, 0)),
        compiler_params=cparams3,
    )(tgt3)
    counts_c = jnp.sum(counts_p[:, :, 0], axis=0)             # (C,) int32
    loss_weight = _class_weights(counts_c, numel)              # (C,)

    per_nll = pl.pallas_call(
        _nll_kernel,
        out_shape=jax.ShapeDtypeStruct((B, 1, S), jnp.float32),
        grid=(B, n_tiles),
        in_specs=[pl.BlockSpec((1, C, t_s), lambda n, s: (n, 0, s)),
                  pl.BlockSpec((1, 1, t_s), lambda n, s: (n, 0, s))],
        out_specs=pl.BlockSpec((1, 1, t_s), lambda n, s: (n, 0, s)),
        compiler_params=pltpu.CompilerParams(
            dimension_semantics=("parallel", "parallel"),
            vmem_limit_bytes=vmem_limit),
    )(logits3, tgt3)

    valid = tgt2 != ignore_index
    w_t = jnp.where(valid, loss_weight[jnp.clip(tgt2, 0, C - 1)], 0.0)  # (B, S)
    per = per_nll[:, 0, :] * w_t
    return per.reshape(target.shape)


# ----------------------------------------------------------------------------
# Pure-JAX reference (mirrors the PyTorch module) for verification
# ----------------------------------------------------------------------------
def _reference(predict, target, ignore_index=-100):
    num_class = predict.shape[1]
    if predict.ndim == 2:
        logits = predict
    else:
        logits = jnp.moveaxis(predict, 1, -1).reshape(-1, num_class)
    t = target.reshape(-1)
    numel = float(t.size)
    valid = t != ignore_index
    t_safe = jnp.where(valid, t, 0)
    counts = jnp.sum(jax.nn.one_hot(t_safe, num_class)
                     * valid[:, None].astype(jnp.float32), axis=0)
    inv = jnp.where(counts > 0, numel / counts, 0.0)
    w = inv / jnp.sum(inv)
    lw = jnp.where(counts > 0, w, 1e-5)
    logp = jax.nn.log_softmax(logits, axis=-1)
    nll = -jnp.take_along_axis(logp, t_safe[:, None], axis=-1)[:, 0]
    wt = lw[t_safe] * valid
    per = nll * wt
    return jnp.sum(per) / jnp.sum(wt), jnp.sum(per), per.reshape(target.shape)


def _check_case(predict, target, ignore_index, **kw):
    loss_mean = jax.block_until_ready(
        locally_weighted_entropy_loss(predict, target, ignore_index, "mean", **kw))
    loss_sum = jax.block_until_ready(
        locally_weighted_entropy_loss(predict, target, ignore_index, "sum", **kw))
    per = jax.block_until_ready(
        locally_weighted_entropy_loss(predict, target, ignore_index, "none", **kw))
    ref_mean, ref_sum, ref_per = _reference(predict, target, ignore_index)
    assert jnp.allclose(loss_mean, ref_mean, rtol=1e-5, atol=1e-5), (loss_mean, ref_mean)
    assert jnp.allclose(loss_sum, ref_sum, rtol=1e-5, atol=1e-5), (loss_sum, ref_sum)
    assert per.shape == target.shape
    assert jnp.allclose(per, ref_per, rtol=1e-5, atol=1e-5)


if __name__ == "__main__":
    key = jax.random.PRNGKey(0)
    k1, k2, k3, k4, k5, k6 = jax.random.split(key, 6)
    ignore_index = -100

    # case 1: small N,C,H,W (single spatial tile path)
    N, C, H, W = 2, 4, 16, 16
    predict = jax.random.normal(k1, (N, C, H, W), dtype=jnp.float32)
    target = jax.random.randint(k2, (N, H, W), 0, C, dtype=jnp.int32)
    target = jnp.where(jax.random.uniform(k3, (N, H, W)) < 0.1,
                       jnp.int32(ignore_index), target)
    _check_case(predict, target, ignore_index)

    # case 2: forced small tiles -> exercises multi-tile grid, the even
    # spatial split (G=2), and the overhanging (masked) tail block.
    N2, C2, H2, W2 = 2, 5, 20, 20          # S = 400, tile 128 -> 4 tiles
    predict2 = jax.random.normal(k4, (N2, C2, H2, W2), dtype=jnp.float32)
    target2 = jax.random.randint(k5, (N2, H2, W2), 0, C2, dtype=jnp.int32)
    target2 = jnp.where(jax.random.uniform(k6, (N2, H2, W2)) < 0.1,
                        jnp.int32(ignore_index), target2)
    _check_case(predict2, target2, ignore_index, _tile_s=128, _tile_h=128)

    print("KERNEL_OK")
</pallas_src>

<mosaic_0001>
module attributes {stable_mosaic.version = 11 : i64} {
  func.func @_fused_kernel(%arg0: i32, %arg1: i32, %arg2: i32, %arg3: memref<1x4x256xf32, #tpu.memory_space<vmem>>, %arg4: memref<1x1x256xi32, #tpu.memory_space<vmem>>, %arg5: memref<1x4x1xf32, #tpu.memory_space<vmem>>, %arg6: memref<1x4x1xf32, #tpu.memory_space<vmem>>, %arg7: memref<4x256xf32, #tpu.memory_space<vmem>>, %arg8: memref<4x256xf32, #tpu.memory_space<vmem>>) attributes {dimension_semantics = [#tpu.dimension_semantics<parallel>, #tpu.dimension_semantics<parallel>, #tpu.dimension_semantics<arbitrary>], iteration_bounds = array<i64: 2, 1, 1>, scalar_prefetch = 0 : i64, scratch_operands = 2 : i64, tpu.core_type = #tpu.core_type<tc>, window_params = [{transform_indices = @transform_0, window_bounds = array<i64: 1, 4, 256>}, {transform_indices = @transform_1, window_bounds = array<i64: 1, 1, 256>}, {transform_indices = @transform_2, window_bounds = array<i64: 1, 4, 1>}, {transform_indices = @transform_3, window_bounds = array<i64: 1, 4, 1>}]} {
    %c0_i32 = arith.constant 0 : i32
    %0 = arith.cmpi eq, %arg2, %c0_i32 : i32
    %1 = arith.extui %0 : i1 to i32
    %c0_i32_0 = arith.constant 0 : i32
    %2 = arith.cmpi ne, %1, %c0_i32_0 : i32
    scf.if %2 {
      %cst_20 = arith.constant 0.000000e+00 : f32
      %51 = vector.broadcast %cst_20 : f32 to vector<4x256xf32>
      %c0_21 = arith.constant 0 : index
      %c0_22 = arith.constant 0 : index
      %52 = vector.load %arg7[%c0_21, %c0_22] : memref<4x256xf32, #tpu.memory_space<vmem>>, vector<4x256xf32>
      tpu.vector_store %arg7[%c0_21, %c0_22], %51 {strides = array<i32>} : memref<4x256xf32, #tpu.memory_space<vmem>>, vector<4x256xf32>,
      %cst_23 = arith.constant 0.000000e+00 : f32
      %53 = vector.broadcast %cst_23 : f32 to vector<4x256xf32>
      %c0_24 = arith.constant 0 : index
      %c0_25 = arith.constant 0 : index
      %54 = vector.load %arg8[%c0_24, %c0_25] : memref<4x256xf32, #tpu.memory_space<vmem>>, vector<4x256xf32>
      tpu.vector_store %arg8[%c0_24, %c0_25], %53 {strides = array<i32>} : memref<4x256xf32, #tpu.memory_space<vmem>>, vector<4x256xf32>,
    } else {
    }
    %c0 = arith.constant 0 : index
    %c0_1 = arith.constant 0 : index
    %c0_2 = arith.constant 0 : index
    %3 = vector.load %arg3[%c0, %c0_1, %c0_2] : memref<1x4x256xf32, #tpu.memory_space<vmem>>, vector<1x4x256xf32>
    %4 = vector.shape_cast %3 : vector<1x4x256xf32> to vector<4x256xf32>
    %c0_3 = arith.constant 0 : index
    %c0_4 = arith.constant 0 : index
    %c0_5 = arith.constant 0 : index
    %5 = vector.load %arg4[%c0_3, %c0_4, %c0_5] : memref<1x1x256xi32, #tpu.memory_space<vmem>>, vector<1x1x256xi32>
    %6 = vector.shape_cast %5 : vector<1x1x256xi32> to vector<1x256xi32>
    %7 = tpu.iota {dimensions = array<i32: 1>} : vector<1x256xi32>
    %c1_i32 = arith.constant 1 : i32
    %8 = arith.muli %arg1, %c1_i32 : i32
    %9 = arith.addi %8, %arg2 : i32
    %c256_i32 = arith.constant 256 : i32
    %10 = arith.muli %9, %c256_i32 : i32
    %11 = vector.broadcast %10 : i32 to vector<1x256xi32>
    %12 = arith.addi %11, %7 : vector<1x256xi32>
    %c256_i32_6 = arith.constant 256 : i32
    %13 = vector.broadcast %c256_i32_6 : i32 to vector<1x256xi32>
    %14 = arith.cmpi slt, %12, %13 : vector<1x256xi32>
    %15 = tpu.iota {dimensions = array<i32: 0>} : vector<4x1xi32>
    %16 = vector.broadcast %6 : vector<1x256xi32> to vector<4x256xi32>
    %17 = vector.broadcast %15 : vector<4x1xi32> to vector<4x256xi32>
    %18 = arith.cmpi eq, %16, %17 : vector<4x256xi32>
    %19 = arith.extui %18 : vector<4x256xi1> to vector<4x256xi32>
    %20 = arith.sitofp %19 : vector<4x256xi32> to vector<4x256xf32>
    %21 = arith.extui %14 : vector<1x256xi1> to vector<1x256xi32>
    %22 = arith.sitofp %21 : vector<1x256xi32> to vector<1x256xf32>
    %23 = vector.broadcast %22 : vector<1x256xf32> to vector<4x256xf32>
    %24 = arith.mulf %20, %23 : vector<4x256xf32>
    %cst = arith.constant dense<0xFF800000> : vector<256xf32>
    %25 = vector.multi_reduction <maximumf>, %4, %cst [0] : vector<4x256xf32> to vector<256xf32>
    %26 = vector.shape_cast %25 : vector<256xf32> to vector<1x256xf32>
    %27 = vector.broadcast %26 : vector<1x256xf32> to vector<4x256xf32>
    %28 = arith.subf %4, %27 : vector<4x256xf32>
    %29 = math.exp %28 : vector<4x256xf32>
    %cst_7 = arith.constant dense<0.000000e+00> : vector<256xf32>
    %30 = vector.multi_reduction <add>, %29, %cst_7 [0] : vector<4x256xf32> to vector<256xf32>
    %31 = vector.shape_cast %30 : vector<256xf32> to vector<1x256xf32>
    %32 = math.log %31 : vector<1x256xf32>
    %33 = arith.addf %26, %32 : vector<1x256xf32>
    %34 = arith.mulf %20, %4 : vector<4x256xf32>
    %cst_8 = arith.constant dense<0.000000e+00> : vector<256xf32>
    %35 = vector.multi_reduction <add>, %34, %cst_8 [0] : vector<4x256xf32> to vector<256xf32>
    %36 = vector.shape_cast %35 : vector<256xf32> to vector<1x256xf32>
    %37 = arith.subf %33, %36 : vector<1x256xf32>
    %cst_9 = arith.constant 0.000000e+00 : f32
    %38 = vector.broadcast %cst_9 : f32 to vector<1x256xf32>
    %39 = arith.select %14, %37, %38 : vector<1x256xi1>, vector<1x256xf32>
    %c0_10 = arith.constant 0 : index
    %c0_11 = arith.constant 0 : index
    %40 = vector.load %arg7[%c0_10, %c0_11] : memref<4x256xf32, #tpu.memory_space<vmem>>, vector<4x256xf32>
    %41 = vector.broadcast %39 : vector<1x256xf32> to vector<4x256xf32>
    %42 = arith.mulf %24, %41 : vector<4x256xf32>
    %43 = arith.addf %40, %42 : vector<4x256xf32>
    %c0_12 = arith.constant 0 : index
    %c0_13 = arith.constant 0 : index
    %44 = vector.load %arg7[%c0_12, %c0_13] : memref<4x256xf32, #tpu.memory_space<vmem>>, vector<4x256xf32>
    tpu.vector_store %arg7[%c0_12, %c0_13], %43 {strides = array<i32>} : memref<4x256xf32, #tpu.memory_space<vmem>>, vector<4x256xf32>,
    %c0_14 = arith.constant 0 : index
    %c0_15 = arith.constant 0 : index
    %45 = vector.load %arg8[%c0_14, %c0_15] : memref<4x256xf32, #tpu.memory_space<vmem>>, vector<4x256xf32>
    %46 = arith.addf %45, %24 : vector<4x256xf32>
    %c0_16 = arith.constant 0 : index
    %c0_17 = arith.constant 0 : index
    %47 = vector.load %arg8[%c0_16, %c0_17] : memref<4x256xf32, #tpu.memory_space<vmem>>, vector<4x256xf32>
    tpu.vector_store %arg8[%c0_16, %c0_17], %46 {strides = array<i32>} : memref<4x256xf32, #tpu.memory_space<vmem>>, vector<4x256xf32>,
    %c0_i32_18 = arith.constant 0 : i32
    %48 = arith.cmpi eq, %arg2, %c0_i32_18 : i32
    %49 = arith.extui %48 : i1 to i32
    %c0_i32_19 = arith.constant 0 : i32
    %50 = arith.cmpi ne, %49, %c0_i32_19 : i32
    scf.if %50 {
      %c0_20 = arith.constant 0 : index
      %c0_21 = arith.constant 0 : index
      %51 = vector.load %arg7[%c0_20, %c0_21] : memref<4x256xf32, #tpu.memory_space<vmem>>, vector<4x256xf32>
      %cst_22 = arith.constant dense<0.000000e+00> : vector<4xf32>
      %52 = vector.multi_reduction <add>, %51, %cst_22 [1] : vector<4x256xf32> to vector<4xf32>
      %53 = vector.shape_cast %52 : vector<4xf32> to vector<4x1xf32>
      %54 = vector.shape_cast %53 : vector<4x1xf32> to vector<1x4x1xf32>
      %c0_23 = arith.constant 0 : index
      %c0_24 = arith.constant 0 : index
      %c0_25 = arith.constant 0 : index
      %55 = vector.load %arg5[%c0_23, %c0_24, %c0_25] : memref<1x4x1xf32, #tpu.memory_space<vmem>>, vector<1x4x1xf32>
      tpu.vector_store %arg5[%c0_23, %c0_24, %c0_25], %54 {strides = array<i32>} : memref<1x4x1xf32, #tpu.memory_space<vmem>>, vector<1x4x1xf32>,
      %c0_26 = arith.constant 0 : index
      %c0_27 = arith.constant 0 : index
      %56 = vector.load %arg8[%c0_26, %c0_27] : memref<4x256xf32, #tpu.memory_space<vmem>>, vector<4x256xf32>
      %cst_28 = arith.constant dense<0.000000e+00> : vector<4xf32>
      %57 = vector.multi_reduction <add>, %56, %cst_28 [1] : vector<4x256xf32> to vector<4xf32>
      %58 = vector.shape_cast %57 : vector<4xf32> to vector<4x1xf32>
      %59 = vector.shape_cast %58 : vector<4x1xf32> to vector<1x4x1xf32>
      %c0_29 = arith.constant 0 : index
      %c0_30 = arith.constant 0 : index
      %c0_31 = arith.constant 0 : index
      %60 = vector.load %arg6[%c0_29, %c0_30, %c0_31] : memref<1x4x1xf32, #tpu.memory_space<vmem>>, vector<1x4x1xf32>
      tpu.vector_store %arg6[%c0_29, %c0_30, %c0_31], %59 {strides = array<i32>} : memref<1x4x1xf32, #tpu.memory_space<vmem>>, vector<1x4x1xf32>,
    } else {
    }
    return
  }
  func.func @transform_0(%arg0: i32, %arg1: i32, %arg2: i32) -> (i32, i32, i32) {
    %c1_i32 = arith.constant 1 : i32
    %0 = arith.muli %arg1, %c1_i32 : i32
    %1 = arith.addi %0, %arg2 : i32
    %c0_i32 = arith.constant 0 : i32
    %c0_i32_0 = arith.constant 0 : i32
    return %arg0, %c0_i32, %1 : i32, i32, i32
  }
  func.func @transform_1(%arg0: i32, %arg1: i32, %arg2: i32) -> (i32, i32, i32) {
    %c1_i32 = arith.constant 1 : i32
    %0 = arith.muli %arg1, %c1_i32 : i32
    %1 = arith.addi %0, %arg2 : i32
    %c0_i32 = arith.constant 0 : i32
    %c0_i32_0 = arith.constant 0 : i32
    return %arg0, %c0_i32, %1 : i32, i32, i32
  }
  func.func @transform_2(%arg0: i32, %arg1: i32, %arg2: i32) -> (i32, i32, i32) {
    %c1_i32 = arith.constant 1 : i32
    %0 = arith.muli %arg0, %c1_i32 : i32
    %1 = arith.addi %0, %arg1 : i32
    %c0_i32 = arith.constant 0 : i32
    %c0_i32_0 = arith.constant 0 : i32
    %c0_i32_1 = arith.constant 0 : i32
    return %1, %c0_i32, %c0_i32_0 : i32, i32, i32
  }
  func.func @transform_3(%arg0: i32, %arg1: i32, %arg2: i32) -> (i32, i32, i32) {
    %c1_i32 = arith.constant 1 : i32
    %0 = arith.muli %arg0, %c1_i32 : i32
    %1 = arith.addi %0, %arg1 : i32
    %c0_i32 = arith.constant 0 : i32
    %c0_i32_0 = arith.constant 0 : i32
    %c0_i32_1 = arith.constant 0 : i32
    return %1, %c0_i32, %c0_i32_0 : i32, i32, i32
  }
}

</mosaic_0001>

<bundles_post_ra>
// kernel: tpu_custom_call.1
= control target key start
LH: loop header
LB: loop body
LE: loop exit
PB: predicated region body
PF: predicated region fallthrough
CT: control target
= control target key end

     0   :  { %9 = vsyncpa [#allocation5], 0  ;;  %s984_s0 = inlined_call_operand.hbm [shape: f32[2,4,256], index: 0, kind: input, shape index: {}]   ;;  %s985_s1 = inlined_call_operand.hbm [shape: s32[2,1,256], index: 1, kind: input, shape index: {}]   ;;  %s986_s2 = inlined_call_operand.vmem [shape: f32[2,4,1], index: 2, kind: output, shape index: {0}]   ;;  %s987_s3 = inlined_call_operand.vmem [shape: f32[2,4,1], index: 3, kind: output, shape index: {1}]  }
   0x1   :  { %11 = vsyncpa [#allocation5 + $0x1], 0 }
   0x2   :  { %12 = vsyncpa [#allocation7], 0 }
   0x3   :  { %14 = vsyncpa [#allocation7 + $0x1], 0  ;;  %s805_s12 = smov 0   ;;  %s807_s13 = smov 0  }
   0x4   :  { %s809_s14 = smov 0   ;;  %s811_s15 = smov 0  }
   0x5   :  { %s813_s16 = smov 0   ;;  %s815_s17 = smov 0  }
   0x6 LB: > { %s575_s18 = sadd.s32 4294967295, %s780_s17   ;;  %s39_s19 = sadd.s32 1, %s776_s16  ;;  %s780_s17 = sphi %s815_s17, %s20_s17   ;;  %s776_s16 = sphi %s813_s16, %s1001_s16   ;;  %s772_s15 = sphi %s811_s15, %s1000_s15   ;;  %s768_s14 = sphi %s809_s14, %s999_s14   ;;  %s764_s13 = sphi %s807_s13, %s998_s13   ;;  %s760_s12 = sphi %s805_s12, %s997_s12  }
   0x7   : > { %p41_p0 = scmp.ge.s32.totalorder %s39_s19, 2  ;;  %s50_s20 = sadd.s32 1, %s768_s14 }
   0x8   : > { %p57_p1 = scmp.ne.s32.totalorder %s768_s14, %s764_s13  ;;  %p58_p2 = scmp.eq.s32.totalorder %s780_s17, 0 }
   0x9   : > { %s1003_s19 = smov (%p41_p0, %s39_s19), 0  ;;  %p63_p4 = scmp.ne.s32.totalorder %s764_s13, %s760_s12 }
   0xa   : > { %p841_p3 = por %p58_p2, %p57_p1  ;;  %s45_s22 = ssub.s32 %s776_s16, %s1003_s19 }
   0xb   : > { %p64_p5 = scmp.eq.s32.totalorder %s575_s18, 0  ;;  %p48_p6 = scmp.eq.s32.totalorder %s45_s22, 0 }
   0xc   : > { %p609_p8 = scmp.lt.s32.totalorder %s780_s17, 2  ;;  %s857_s25 = sand.u32 1, %s768_s14  }
   0xd   : > { %p848_p7 = por %p64_p5, %p63_p4  ;;  %s594_s26 = sshll.u32 %s776_s16, 7 }
   0xe   : > { %s854_s24 = scalar_select %p48_p6, %s768_s14, %s50_s20  }
   0xf   : > { %s990_s23 = scalar_select %p848_p7, 1, 0 }
  0x10   : > { %s579_s27 = sshll.u32 %s857_s25, 3  ;;  %s864_s30 = scalar_lea.hbm %s984_s0, %s594_s26 }
  0x11   : > { %s177_s4 = scalar_lea.vmem [#allocation4], %s579_s27  ;;  %p868_p9 = pnand %p609_p8, %p841_p3 }
  0x12   : > { %s188_s5 = sshll.u32 %s177_s4, 4  ;;  %s174_s7 = scalar_lea.sflag [#allocation5], %s857_s25  ;;  %s872_s5 = int_to_ptr.vmem [resolvable:$true] %s188_s5 }
  0x13   : > { %s666_s8 = scalar_lea.hbm %s864_s30, 128  ;;  %p668_p13 = pneg %p868_p9 }
  0x14   : > { %p667_p12 = scmp.ne.s32.totalorder %s864_s30, %s666_s8  ;;  %s671_s11 = scalar_lea.hbm %s984_s0, 256 }
  0x15   : > { %p672_p2 = scmp.lt.u32.totalorder %s864_s30, %s984_s0  ;;  %p673_p3 = scmp.lt.u32.totalorder %s671_s11, %s666_s8 }
  0x16   : > { %p669_p0 = pnand %p668_p13, %p667_p12  ;;  %p675_p5 = scmp.lt.u32.totalorder %s666_s8, %s864_s30 }
  0x17   : > { %p674_p4 = por %p673_p3, %p672_p2 }
  0x18   : > { %p670_p1 = pneg %p669_p0 }
  0x19   : > { %p676_p6 = por %p675_p5, %p674_p4 }
  0x1b   : > { %p677_p8 = pnand %p676_p6, %p670_p1 }
  0x1d   : > { %680 = shalt.err (!%p677_p8)
}
  0x1e   : > { %s681_s20 = scalar_lea.vmem %s872_s5, 128  ;;  %s782_s21 = smov [#allocation4]  }
  0x1f   : > { %p682_p12 = scmp.ne.s32.totalorder %s872_s5, %s681_s20  ;;  %s686_s22 = sshll.u32 %s782_s21, 4  ;;  %s687_s22 = int_to_ptr.vmem [resolvable:$false] %s686_s22 }
  0x20   : > { %s688_s26 = scalar_lea.vmem %s687_s22, 256  ;;  %p689_p11 = scmp.lt.s32.totalorder %s872_s5, %s687_s22 }
  0x21   : > { %p684_p0 = pnand %p682_p12, %p668_p13  ;;  %p690_p2 = scmp.lt.s32.totalorder %s688_s26, %s681_s20 }
  0x23   : > { %p685_p10 = pneg %p684_p0  ;;  %p691_p3 = por %p690_p2, %p689_p11 }
  0x25   : > { %p692_p4 = pnand %p691_p3, %p685_p10 }
  0x27   : > { %695 = shalt.err (!%p692_p4)
}
  0x28   : > { %605 = dma.hbm_to_vmem [thread:$0]  (!%p868_p9), %s864_s30, 128, %s872_s5, %s174_s7  }
  0x29   : > { %p992_p1 = scmp.lt.s32.totalorder %s780_s17, 3  ;;  %p993_p5 = scmp.ge.s32.totalorder %s780_s17, 1 }
  0x2a   : > { %s582_s28 = sshll.u32 %s857_s25, 1  ;;  %s595_s29 = sshll.u32 %s776_s16, 5 }
  0x2b   : > { %p906_p6 = pnand %p993_p5, %p992_p1  ;;  %s915_s9 = scalar_lea.hbm %s985_s1, %s595_s29 }
  0x2c   : > { %s199_s10 = scalar_lea.vmem [#allocation6], %s582_s28  ;;  %s196_s30 = scalar_lea.sflag [#allocation7], %s857_s25 }
  0x2d   : > { %s994_s27 = scalar_select %p906_p6, 1, 0 }
  0x2e   : > { %s210_s11 = sshll.u32 %s199_s10, 4  ;;  %s696_s5 = scalar_lea.hbm %s915_s9, 32  ;;  %s211_s11 = int_to_ptr.vmem [resolvable:$true] %s210_s11 }
  0x2f   : > { %p697_p10 = scmp.ne.s32.totalorder %s915_s9, %s696_s5  ;;  %s701_s18 = scalar_lea.hbm %s985_s1, 64 }
  0x30   : > { %p702_p12 = scmp.lt.u32.totalorder %s915_s9, %s985_s1  ;;  %p703_p0 = scmp.lt.u32.totalorder %s701_s18, %s696_s5 }
  0x31   : > { %p699_p11 = pnand %p697_p10, %p668_p13  ;;  %p705_p3 = scmp.lt.u32.totalorder %s696_s5, %s915_s9 }
  0x32   : > { %p704_p2 = por %p703_p0, %p702_p12 }
  0x33   : > { %p700_p8 = pneg %p699_p11 }
  0x34   : > { %p706_p4 = por %p705_p3, %p704_p2 }
  0x36   : > { %p707_p1 = pnand %p706_p4, %p700_p8 }
  0x38   : > { %710 = shalt.err (!%p707_p1)
}
  0x39   : > { %s711_s25 = scalar_lea.vmem %s211_s11, 32  ;;  %s783_s22 = smov [#allocation6]  }
  0x3a   : > { %p712_p5 = scmp.ne.s32.totalorder %s211_s11, %s711_s25  ;;  %s716_s26 = sshll.u32 %s783_s22, 4  ;;  %s717_s26 = int_to_ptr.vmem [resolvable:$false] %s716_s26 }
  0x3b   : > { %s718_s28 = scalar_lea.vmem %s717_s26, 64  ;;  %p719_p7 = scmp.lt.s32.totalorder %s211_s11, %s717_s26 }
  0x3c   : > { %p714_p10 = pnand %p712_p5, %p668_p13  ;;  %p720_p6 = scmp.lt.s32.totalorder %s718_s28, %s711_s25 }
  0x3e   : > { %p715_p11 = pneg %p714_p10  ;;  %p721_p0 = por %p720_p6, %p719_p7 }
  0x40   : > { %p722_p12 = pnand %p721_p0, %p715_p11 }
  0x42   : > { %725 = shalt.err (!%p722_p12)
}
  0x43   : > { %608 = dma.hbm_to_vmem [thread:$0]  (!%p868_p9), %s915_s9, 32, %s211_s11, %s196_s30  }
  0x44   : > { %p995_p8 = scmp.ne.s32.totalorder %s994_s27, 0 }
  0x45   : > { %s221_s29 = sand.u32 (!%p995_p8), 1, %s764_s13   ;;  %p996_p13 = scmp.ne.s32.totalorder (!%p995_p8), %s990_s23, 0 }
  0x46   : > { %219 = sbr.rel (%p995_p8) target bundleno = 300 (0x12c), region = 28  ;;  %s586_s4 = sshll.u32 (!%p995_p8), %s221_s29, 3 }
  0x47   : > { %s222_s8 = scalar_lea.sflag (!%p995_p8), [#allocation5], %s221_s29  ;;  %s225_s10 = scalar_lea.vmem (!%p995_p8), [#allocation4], %s586_s4 }
  0x4d   : > { %751 = dma.done.wait (%p996_p13), %s222_s8, 128  }
  0x4e   : > { %753 = vsyncadd (%p996_p13), %s222_s8, 4294967168  ;;  %s587_s5 = sshll.u32 %s221_s29, 1  ;;  %s231_s7 = scalar_lea.sflag [#allocation7], %s221_s29 }
  0x4f   : > { %s234_s6 = scalar_lea.vmem [#allocation6], %s587_s5 }
  0x50   : > { %755 = dma.done.wait (%p996_p13), %s231_s7, 32  }
  0x51   : > { %757 = vsyncadd (%p996_p13), %s231_s7, 4294967264  ;;  %vm326_vm0 = vcmask 1043456   ;;  %v289_v0 = vld [vmem:[%s225_s10] sm:$0xff]  ;;  %v301_v9 = vlaneseq  ;;  %v290_v20 = vld [vmem:[%s234_s6] sm:$0x3]  ;;  %v784_v26 = vmov 0.0  }
  0x52   : > { %v324_v1 = vcombine.high %v289_v0, %v289_v0  ;;  %v327_v2 = vsel %vm326_vm0, %v289_v0, -inf  ;;  %p272_p7 = scmp.lt.s32.totalorder %s772_s15, 1  ;;  %vm419_vm3 = vcmask 3072  }
  0x53   : > { %v328_v3 = vrot.slane %v327_v2, 4  ;;  %v302_v14 = vshrl.u32 %v301_v9, 7 }
  0x54   : > { %v334_v4 = vsel %vm326_vm0, %v324_v1, -inf  ;;  %s1005_s15 = smov (!%p272_p7, %s772_s15), 1 }
  0x55   : > { %v329_v5 = vmax.f32 %v327_v2, %v328_v3  ;;  %v335_v6 = vrot.slane %v334_v4, 4  ;;  %v305_v18 = vsub.s32 0, %v302_v14  ;;  %v309_v21 = vsub.s32 1, %v302_v14  ;;  %s588_s23 = sshll.u32 %s1005_s15, 2 }
  0x56   : > { %s275_s11 = scalar_lea.vmem %s986_s2, %s588_s23  ;;  %s281_s18 = scalar_lea.vmem %s987_s3, %s588_s23 }
  0x57   : > { %v330_v7 = vrot.slane %v329_v5, 2  ;;  %v336_v8 = vmax.f32 %v334_v4, %v335_v6  ;;  %v306_v23 = vrot.slane %v290_v20, %v305_v18  ;;  %v310_v25 = vrot.slane %v290_v20, %v309_v21 }
  0x59   : > { %v331_v10 = vmax.f32 %v329_v5, %v330_v7  ;;  %v337_v11 = vrot.slane %v336_v8, 2  ;;  %vm311_vm1 = vcmp.eq.s32.totalorder %v306_v23, %v302_v14  ;;  %vm312_vm2 = vcmp.eq.s32.totalorder %v310_v25, %v302_v14 }
  0x5a   : > { %v590_v27 = vsel %vm311_vm1, 1.0, %v784_v26  ;;  %v591_v28 = vsel %vm312_vm2, 1.0, %v784_v26 }
  0x5b   : > { %v332_v12 = vrot.slane %v331_v10, 1  ;;  %v338_v13 = vmax.f32 %v336_v8, %v337_v11  ;;  %v371_v29 = vmul.f32 %v590_v27, %v289_v0  ;;  %v372_v31 = vmul.f32 %v591_v28, %v324_v1 }
  0x5c   : > { %v403_v7 = vcombine.low %v590_v27, %v591_v28  ;;  %v597_v8 = vcombine.low %v591_v28, %v591_v28 }
  0x5d   : > { %v333_v15 = vmax.f32 %v331_v10, %v332_v12  ;;  %v339_v16 = vrot.slane %v338_v13, 1  ;;  %v373_v35 = vsel %vm326_vm0, %v371_v29, 0.0  ;;  %v380_v39 = vsel %vm326_vm0, %v372_v31, 0.0 }
  0x5e   : > { %v374_v40 = vrot.slane %v373_v35, 4  ;;  %v381_v43 = vrot.slane %v380_v39, 4  ;;  %v426_v14 = vsel %vm326_vm0, %v597_v8, 0.0 }
  0x5f   : > { %v340_v17 = vmax.f32 %v338_v13, %v339_v16  ;;  %v425_v13 = vsel %vm326_vm0, %v403_v7, 0.0 }
  0x60   : > { %v375_v46 = vadd.f32 %v374_v40, %v373_v35  ;;  %v382_v49 = vadd.f32 %v381_v43, %v380_v39  ;;  %v427_v16 = vadd.f32 %v426_v14, %v425_v13 }
  0x61   : > { %v343_v19 = vcombine.low %v333_v15, %v340_v17 }
  0x62   : > { %v376_v52 = vrot.slane %v375_v46, 2  ;;  %v383_v54 = vrot.slane %v382_v49, 2 }
  0x63   : > { %v345_v22 = vsub.f32 %v289_v0, %v343_v19 }
  0x64   : > { %v377_v55 = vadd.f32 %v376_v52, %v375_v46  ;;  %v384_v56 = vadd.f32 %v383_v54, %v382_v49 }
  0x65   : > { %v346_v24 = vmul.f32 1.442695, %v345_v22 }
  0x66   : > { %v378_v57 = vrot.slane %v377_v55, 1  ;;  %v385_v58 = vrot.slane %v384_v56, 1 }
  0x67   : > { %660 = vpow2.f32 %v346_v24 }
  0x68   : > { %v379_v61 = vadd.f32 %v378_v57, %v377_v55  ;;  %v386_v1 = vadd.f32 %v385_v58, %v384_v56 }
  0x71   : > { %v661_v30 = vpop.eup %660 }
  0x72   : > { %v349_v32 = vcombine.high %v661_v30, %v661_v30  ;;  %v351_v33 = vsel %vm326_vm0, %v661_v30, 0.0 }
  0x73   : > { %v352_v34 = vrot.slane %v351_v33, 4 }
  0x74   : > { %v358_v36 = vsel %vm326_vm0, %v349_v32, 0.0 }
  0x75   : > { %v353_v37 = vadd.f32 %v352_v34, %v351_v33  ;;  %v359_v38 = vrot.slane %v358_v36, 4 }
  0x77   : > { %v354_v41 = vrot.slane %v353_v37, 2  ;;  %v360_v42 = vadd.f32 %v359_v38, %v358_v36 }
  0x79   : > { %v355_v44 = vadd.f32 %v354_v41, %v353_v37  ;;  %v361_v45 = vrot.slane %v360_v42, 2 }
  0x7b   : > { %v356_v47 = vrot.slane %v355_v44, 1  ;;  %v362_v48 = vadd.f32 %v361_v45, %v360_v42 }
  0x7d   : > { %v357_v50 = vadd.f32 %v356_v47, %v355_v44  ;;  %v363_v51 = vrot.slane %v362_v48, 1 }
  0x7f   : > { %v364_v53 = vadd.f32 %v363_v51, %v362_v48  ;;  %662 = vlog2.f32 %v357_v50 }
  0x81   : > { %664 = vlog2.f32 %v364_v53 }
  0x89   : > { %v663_v59 = vpop.eup %662 }
  0x8a   : > { %v366_v60 = vmul.f32 0.6931472, %v663_v59 }
  0x8b   : > { %v665_v62 = vpop.eup %664 }
  0x8c   : > { %v368_v63 = vmul.f32 0.6931472, %v665_v62  ;;  %v369_v0 = vadd.f32 %v366_v60, %v333_v15 }
  0x8e   : > { %v370_v2 = vadd.f32 %v368_v63, %v340_v17  ;;  %v387_v3 = vsub.f32 %v369_v0, %v379_v61 }
  0x90   : > { %v388_v4 = vsub.f32 %v370_v2, %v386_v1  ;;  %v392_v5 = vmul.f32 %v590_v27, %v387_v3 }
  0x92   : > { %v393_v6 = vmul.f32 %v591_v28, %v388_v4 }
  0x94   : > { %v396_v9 = vcombine.low %v392_v5, %v393_v6  ;;  %v596_v10 = vcombine.low %v393_v6, %v393_v6 }
  0x96   : > { %v414_v11 = vsel %vm326_vm0, %v396_v9, 0.0  ;;  %v415_v12 = vsel %vm326_vm0, %v596_v10, 0.0 }
  0x97   : > { %v416_v15 = vadd.f32 %v415_v12, %v414_v11 }
  0x99   : > { %417 = vadd.xlane.f32.xlu0 %v416_v15 }
  0x9d   : > { %428 = vadd.xlane.f32.xlu0 %v427_v16 }
 0x126   : > { %v418_v17 = vpop.xlane.xlu0 %417 }
 0x127   : > { %420 = vst.msk [vmem:[%s275_s11] sm:$0xf] %vm419_vm3, %v418_v17 }
 0x12a   : > { %v429_v18 = vpop.xlane.xlu0 %428 }
 0x12b   : > { %430 = vst.msk [vmem:[%s281_s18] sm:$0xf] %vm419_vm3, %v429_v18 }
 0x12c PF: > { %s20_s17 = sadd.s32 1, %s780_s17   ;;  %s997_s12 = smov %s764_s13 }
 0x12d   : > { %p17_p9 = scmp.ge.s32.totalorder %s20_s17, 4   ;;  %s998_s13 = smov %s768_s14 }
 0x12e   : > { %s999_s14 = smov %s854_s24  ;;  %s1000_s15 = smov %s776_s16 }
 0x12f   : > { %s1001_s16 = smov %s1003_s19  ;;  %19 = sbr.rel (!%p17_p9) target bundleno = 6 (0x6), region = 101 }
 0x136   :  { %470 = vsyncpa [#allocation5], 1 }
 0x137   :  { %472 = vsyncpa [#allocation5 + $0x1], 1 }
 0x138   :  { %473 = vsyncpa [#allocation7], 1 }
 0x139   :  { %475 = vsyncpa [#allocation7 + $0x1], 1 }

</bundles_post_ra>
